<compile_context>
chip_gen: v5e
topology: v5e:2x2
jax: 0.10.0
libtpu: 0.0.40
codegen_flags: <defaults>
</compile_context>

<pallas_src>
import math
from functools import partial

import jax
import jax.numpy as jnp
import numpy as np
from jax.experimental import pallas as pl
from jax.experimental.pallas import tpu as pltpu


def _mha_untie_kernel(*refs, heads: int, d_k: int, has_mask: bool, mask_heads: int):
    if has_mask:
        (q_ref, k_ref, v_ref, pe_ref, mask_ref,
         wq_ref, wk_ref, wv_ref, wo_ref, b_ref, o_ref) = refs
    else:
        (q_ref, k_ref, v_ref, pe_ref,
         wq_ref, wk_ref, wv_ref, wo_ref, b_ref, o_ref) = refs
        mask_ref = None

    scale = jnp.float32(1.0 / math.sqrt(2 * d_k))
    neg_big = jnp.float32(-100000000.0)

    q = q_ref[...]          # (S, d_model)
    k = k_ref[...]
    v = v_ref[...]
    b_all = b_ref[...]      # (4, d_model): rows = bq, bk, bv, bo

    # Input projections on the MXU (weights pre-laid-out (in, out)).
    qp = jnp.dot(q, wq_ref[...], preferred_element_type=jnp.float32) + b_all[0:1, :]
    kp = jnp.dot(k, wk_ref[...], preferred_element_type=jnp.float32) + b_all[1:2, :]
    vp = jnp.dot(v, wv_ref[...], preferred_element_type=jnp.float32) + b_all[2:3, :]

    head_outs = []
    for h in range(heads):                      # static unroll over heads
        sl = slice(h * d_k, (h + 1) * d_k)
        qh = qp[:, sl]                          # (S, d_k)
        kh = kp[:, sl]
        vh = vp[:, sl]

        # scores = q k^T / sqrt(2*d_k) + pe  (contract on d_k directly)
        s = jax.lax.dot_general(
            qh, kh, dimension_numbers=(((1,), (1,)), ((), ())),
            preferred_element_type=jnp.float32) * scale
        s = s + pe_ref[h]
        if has_mask:
            mh = mask_ref[h] if mask_heads > 1 else mask_ref[0]
            s = jnp.where(mh == 0.0, neg_big, s)

        # Numerically stable softmax along the key axis.
        s = s - jnp.max(s, axis=-1, keepdims=True)
        p = jnp.exp(s)
        p = p / jnp.sum(p, axis=-1, keepdims=True)

        head_outs.append(jnp.dot(p, vh, preferred_element_type=jnp.float32))  # (S, d_k)

    concat = jnp.concatenate(head_outs, axis=-1)                  # (S, d_model)
    out = jnp.dot(concat, wo_ref[...],
                  preferred_element_type=jnp.float32) + b_all[3:4, :]
    o_ref[...] = out.astype(o_ref.dtype)


def multi_head_attention_untie(q, k, v, scores_pe, params, heads: int, mask=None):
    """Pallas equivalent of MultiHeadAttention_untie(heads, d_model).forward."""
    bs, S, d_model = q.shape
    d_k = d_model // heads
    assert d_k * heads == d_model

    wq, wk, wv, wo = params["wq"], params["wk"], params["wv"], params["wo"]
    biases = jnp.stack([params["bq"], params["bk"],
                        params["bv"], params["bo"]], axis=0)      # (4, d_model)

    has_mask = mask is not None
    mask_heads = 1

    row_spec = pl.BlockSpec((None, S, d_model), lambda b: (b, 0, 0))
    pe_spec = pl.BlockSpec((None, heads, S, S), lambda b: (b, 0, 0, 0))
    w_spec = pl.BlockSpec((d_model, d_model), lambda b: (0, 0))
    b_spec = pl.BlockSpec((4, d_model), lambda b: (0, 0))

    in_specs = [row_spec, row_spec, row_spec, pe_spec]
    inputs = [q, k, v, scores_pe]
    if has_mask:
        mask = jnp.asarray(mask, jnp.float32)
        # Bring mask to rank 4 and broadcast batch/seq dims; keep the head
        # extent as-is (1 or heads) to avoid redundant HBM traffic.
        while mask.ndim < 4:
            mask = mask[None]
        mask_heads = heads if mask.shape[1] == heads else 1
        mask_f = jnp.broadcast_to(mask, (bs, mask_heads, S, S))
        in_specs.append(pl.BlockSpec((None, mask_heads, S, S),
                                     lambda b: (b, 0, 0, 0)))
        inputs.append(mask_f)
    in_specs += [w_spec, w_spec, w_spec, w_spec, b_spec]
    inputs += [wq, wk, wv, wo, biases]

    kernel = partial(_mha_untie_kernel, heads=heads, d_k=d_k,
                     has_mask=has_mask, mask_heads=mask_heads)

    return pl.pallas_call(
        kernel,
        out_shape=jax.ShapeDtypeStruct((bs, S, d_model), jnp.float32),
        grid=(bs,),
        in_specs=in_specs,
        out_specs=pl.BlockSpec((None, S, d_model), lambda b: (b, 0, 0)),
        compiler_params=pltpu.CompilerParams(
            dimension_semantics=("parallel",)),
    )(*inputs)


def _reference(q, k, v, scores_pe, params, heads, mask=None):
    """Pure-JAX transcription of the PyTorch forward."""
    bs, S, d_model = q.shape
    d_k = d_model // heads

    def proj(x, w, b):
        return (x @ w + b).reshape(bs, S, heads, d_k).transpose(0, 2, 1, 3)

    qp = proj(q, params["wq"], params["bq"])
    kp = proj(k, params["wk"], params["bk"])
    vp = proj(v, params["wv"], params["bv"])
    scores = jnp.einsum("bhqd,bhkd->bhqk", qp, kp) / math.sqrt(2 * d_k)
    scores = scores + scores_pe
    if mask is not None:
        scores = jnp.where(mask == 0, -100000000.0, scores)
    scores = jax.nn.softmax(scores, axis=-1)
    out = jnp.einsum("bhqk,bhkd->bhqd", scores, vp)
    concat = out.transpose(0, 2, 1, 3).reshape(bs, S, d_model)
    return concat @ params["wo"] + params["bo"]


if __name__ == "__main__":
    batch, seq, heads, d_model = 2, 8, 4, 32

    key = jax.random.PRNGKey(0)
    keys = jax.random.split(key, 13)
    xav = math.sqrt(6.0 / (d_model + d_model))

    q = jax.random.normal(keys[0], (batch, seq, d_model), jnp.float32)
    k = jax.random.normal(keys[1], (batch, seq, d_model), jnp.float32)
    v = jax.random.normal(keys[2], (batch, seq, d_model), jnp.float32)
    scores_pe = jax.random.normal(keys[3], (batch, heads, seq, seq), jnp.float32)

    params = {
        # Weights stored (in_features, out_features): the kernel computes x @ W + b,
        # equivalent to torch's x @ W_t.T + b with W = W_t.T.
        "wq": jax.random.uniform(keys[4], (d_model, d_model), jnp.float32, -xav, xav),
        "wk": jax.random.uniform(keys[5], (d_model, d_model), jnp.float32, -xav, xav),
        "wv": jax.random.uniform(keys[6], (d_model, d_model), jnp.float32, -xav, xav),
        "wo": jax.random.uniform(keys[7], (d_model, d_model), jnp.float32, -xav, xav),
        "bq": 0.1 * jax.random.normal(keys[8], (d_model,), jnp.float32),
        "bk": 0.1 * jax.random.normal(keys[9], (d_model,), jnp.float32),
        "bv": 0.1 * jax.random.normal(keys[10], (d_model,), jnp.float32),
        "bo": 0.1 * jax.random.normal(keys[11], (d_model,), jnp.float32),
    }

    # --- no-mask path (module default, mask=None) ---
    out = jax.block_until_ready(
        multi_head_attention_untie(q, k, v, scores_pe, params, heads))
    ref = _reference(q, k, v, scores_pe, params, heads)
    np.testing.assert_allclose(np.asarray(out), np.asarray(ref), rtol=1e-4, atol=1e-4)

    # --- masked path (masked_fill(mask == 0, -1e8)) ---
    mask = (jax.random.uniform(keys[12], (batch, 1, seq, seq)) > 0.3).astype(jnp.int32)
    out_m = jax.block_until_ready(
        multi_head_attention_untie(q, k, v, scores_pe, params, heads, mask=mask))
    ref_m = _reference(q, k, v, scores_pe, params, heads, mask=mask)
    np.testing.assert_allclose(np.asarray(out_m), np.asarray(ref_m), rtol=1e-4, atol=1e-4)

    print("KERNEL_OK")
</pallas_src>

<mosaic_0001>
module attributes {stable_mosaic.version = 11 : i64} {
  func.func @_mha_untie_kernel(%arg0: i32, %arg1: memref<1x8x32xf32, #tpu.memory_space<vmem>>, %arg2: memref<1x8x32xf32, #tpu.memory_space<vmem>>, %arg3: memref<1x8x32xf32, #tpu.memory_space<vmem>>, %arg4: memref<1x4x8x8xf32, #tpu.memory_space<vmem>>, %arg5: memref<32x32xf32, #tpu.memory_space<vmem>>, %arg6: memref<32x32xf32, #tpu.memory_space<vmem>>, %arg7: memref<32x32xf32, #tpu.memory_space<vmem>>, %arg8: memref<32x32xf32, #tpu.memory_space<vmem>>, %arg9: memref<4x32xf32, #tpu.memory_space<vmem>>, %arg10: memref<1x8x32xf32, #tpu.memory_space<vmem>>) attributes {dimension_semantics = [#tpu.dimension_semantics<parallel>], iteration_bounds = array<i64: 2>, scalar_prefetch = 0 : i64, scratch_operands = 0 : i64, tpu.core_type = #tpu.core_type<tc>, window_params = [{transform_indices = @transform_0, window_bounds = array<i64: 1, 8, 32>}, {transform_indices = @transform_1, window_bounds = array<i64: 1, 8, 32>}, {transform_indices = @transform_2, window_bounds = array<i64: 1, 8, 32>}, {transform_indices = @transform_3, window_bounds = array<i64: 1, 4, 8, 8>}, {pipeline_mode = #tpu.pipeline_mode<synchronous>, transform_indices = @transform_4, window_bounds = array<i64: 32, 32>}, {pipeline_mode = #tpu.pipeline_mode<synchronous>, transform_indices = @transform_5, window_bounds = array<i64: 32, 32>}, {pipeline_mode = #tpu.pipeline_mode<synchronous>, transform_indices = @transform_6, window_bounds = array<i64: 32, 32>}, {pipeline_mode = #tpu.pipeline_mode<synchronous>, transform_indices = @transform_7, window_bounds = array<i64: 32, 32>}, {pipeline_mode = #tpu.pipeline_mode<synchronous>, transform_indices = @transform_8, window_bounds = array<i64: 4, 32>}, {transform_indices = @transform_9, window_bounds = array<i64: 1, 8, 32>}]} {
    %c0 = arith.constant 0 : index
    %c0_0 = arith.constant 0 : index
    %c0_1 = arith.constant 0 : index
    %0 = vector.load %arg1[%c0, %c0_0, %c0_1] : memref<1x8x32xf32, #tpu.memory_space<vmem>>, vector<1x8x32xf32>
    %1 = vector.shape_cast %0 : vector<1x8x32xf32> to vector<8x32xf32>
    %c0_2 = arith.constant 0 : index
    %c0_3 = arith.constant 0 : index
    %c0_4 = arith.constant 0 : index
    %2 = vector.load %arg2[%c0_2, %c0_3, %c0_4] : memref<1x8x32xf32, #tpu.memory_space<vmem>>, vector<1x8x32xf32>
    %3 = vector.shape_cast %2 : vector<1x8x32xf32> to vector<8x32xf32>
    %c0_5 = arith.constant 0 : index
    %c0_6 = arith.constant 0 : index
    %c0_7 = arith.constant 0 : index
    %4 = vector.load %arg3[%c0_5, %c0_6, %c0_7] : memref<1x8x32xf32, #tpu.memory_space<vmem>>, vector<1x8x32xf32>
    %5 = vector.shape_cast %4 : vector<1x8x32xf32> to vector<8x32xf32>
    %c0_8 = arith.constant 0 : index
    %c0_9 = arith.constant 0 : index
    %6 = vector.load %arg9[%c0_8, %c0_9] : memref<4x32xf32, #tpu.memory_space<vmem>>, vector<4x32xf32>
    %c0_10 = arith.constant 0 : index
    %c0_11 = arith.constant 0 : index
    %7 = vector.load %arg5[%c0_10, %c0_11] : memref<32x32xf32, #tpu.memory_space<vmem>>, vector<32x32xf32>
    %cst = arith.constant dense<0.000000e+00> : vector<8x32xf32>
    %8 = tpu.matmul %1, %7, %cst {dimension_numbers = #tpu.dot_dimension_numbers<[1], [0], [0], [1], [0, 0, 1, 1], [], []>} : vector<8x32xf32>, vector<32x32xf32>, vector<8x32xf32> -> vector<8x32xf32>
    %9 = vector.extract_strided_slice %6 {offsets = [0, 0], sizes = [1, 32], strides = [1, 1]} : vector<4x32xf32> to vector<1x32xf32>
    %10 = vector.broadcast %9 : vector<1x32xf32> to vector<8x32xf32>
    %11 = arith.addf %8, %10 : vector<8x32xf32>
    %c0_12 = arith.constant 0 : index
    %c0_13 = arith.constant 0 : index
    %12 = vector.load %arg6[%c0_12, %c0_13] : memref<32x32xf32, #tpu.memory_space<vmem>>, vector<32x32xf32>
    %cst_14 = arith.constant dense<0.000000e+00> : vector<8x32xf32>
    %13 = tpu.matmul %3, %12, %cst_14 {dimension_numbers = #tpu.dot_dimension_numbers<[1], [0], [0], [1], [0, 0, 1, 1], [], []>} : vector<8x32xf32>, vector<32x32xf32>, vector<8x32xf32> -> vector<8x32xf32>
    %14 = vector.extract_strided_slice %6 {offsets = [1, 0], sizes = [1, 32], strides = [1, 1]} : vector<4x32xf32> to vector<1x32xf32>
    %15 = vector.broadcast %14 : vector<1x32xf32> to vector<8x32xf32>
    %16 = arith.addf %13, %15 : vector<8x32xf32>
    %c0_15 = arith.constant 0 : index
    %c0_16 = arith.constant 0 : index
    %17 = vector.load %arg7[%c0_15, %c0_16] : memref<32x32xf32, #tpu.memory_space<vmem>>, vector<32x32xf32>
    %cst_17 = arith.constant dense<0.000000e+00> : vector<8x32xf32>
    %18 = tpu.matmul %5, %17, %cst_17 {dimension_numbers = #tpu.dot_dimension_numbers<[1], [0], [0], [1], [0, 0, 1, 1], [], []>} : vector<8x32xf32>, vector<32x32xf32>, vector<8x32xf32> -> vector<8x32xf32>
    %19 = vector.extract_strided_slice %6 {offsets = [2, 0], sizes = [1, 32], strides = [1, 1]} : vector<4x32xf32> to vector<1x32xf32>
    %20 = vector.broadcast %19 : vector<1x32xf32> to vector<8x32xf32>
    %21 = arith.addf %18, %20 : vector<8x32xf32>
    %22 = vector.extract_strided_slice %11 {offsets = [0, 0], sizes = [8, 8], strides = [1, 1]} : vector<8x32xf32> to vector<8x8xf32>
    %23 = vector.extract_strided_slice %16 {offsets = [0, 0], sizes = [8, 8], strides = [1, 1]} : vector<8x32xf32> to vector<8x8xf32>
    %24 = vector.extract_strided_slice %21 {offsets = [0, 0], sizes = [8, 8], strides = [1, 1]} : vector<8x32xf32> to vector<8x8xf32>
    %cst_18 = arith.constant dense<0.000000e+00> : vector<8x8xf32>
    %25 = tpu.matmul %22, %23, %cst_18 {dimension_numbers = #tpu.dot_dimension_numbers<[1], [1], [0], [0], [0, 0, 1, 0], [], []>} : vector<8x8xf32>, vector<8x8xf32>, vector<8x8xf32> -> vector<8x8xf32>
    %cst_19 = arith.constant 2.500000e-01 : f32
    %26 = vector.broadcast %cst_19 : f32 to vector<8x8xf32>
    %27 = arith.mulf %25, %26 : vector<8x8xf32>
    %c0_20 = arith.constant 0 : index
    %c0_21 = arith.constant 0 : index
    %c0_22 = arith.constant 0 : index
    %c0_23 = arith.constant 0 : index
    %28 = vector.load %arg4[%c0_20, %c0_21, %c0_22, %c0_23] : memref<1x4x8x8xf32, #tpu.memory_space<vmem>>, vector<1x1x8x8xf32>
    %29 = vector.shape_cast %28 : vector<1x1x8x8xf32> to vector<8x8xf32>
    %30 = arith.addf %27, %29 : vector<8x8xf32>
    %cst_24 = arith.constant dense<0xFF800000> : vector<8xf32>
    %31 = vector.multi_reduction <maximumf>, %30, %cst_24 [1] : vector<8x8xf32> to vector<8xf32>
    %32 = vector.shape_cast %31 : vector<8xf32> to vector<8x1xf32>
    %33 = vector.broadcast %32 : vector<8x1xf32> to vector<8x8xf32>
    %34 = arith.subf %30, %33 : vector<8x8xf32>
    %35 = math.exp %34 : vector<8x8xf32>
    %cst_25 = arith.constant dense<0.000000e+00> : vector<8xf32>
    %36 = vector.multi_reduction <add>, %35, %cst_25 [1] : vector<8x8xf32> to vector<8xf32>
    %37 = vector.shape_cast %36 : vector<8xf32> to vector<8x1xf32>
    %38 = vector.broadcast %37 : vector<8x1xf32> to vector<8x8xf32>
    %39 = arith.divf %35, %38 : vector<8x8xf32>
    %cst_26 = arith.constant dense<0.000000e+00> : vector<8x8xf32>
    %40 = tpu.matmul %39, %24, %cst_26 {dimension_numbers = #tpu.dot_dimension_numbers<[1], [0], [0], [1], [0, 0, 1, 1], [], []>} : vector<8x8xf32>, vector<8x8xf32>, vector<8x8xf32> -> vector<8x8xf32>
    %41 = vector.extract_strided_slice %11 {offsets = [0, 8], sizes = [8, 8], strides = [1, 1]} : vector<8x32xf32> to vector<8x8xf32>
    %42 = vector.extract_strided_slice %16 {offsets = [0, 8], sizes = [8, 8], strides = [1, 1]} : vector<8x32xf32> to vector<8x8xf32>
    %43 = vector.extract_strided_slice %21 {offsets = [0, 8], sizes = [8, 8], strides = [1, 1]} : vector<8x32xf32> to vector<8x8xf32>
    %cst_27 = arith.constant dense<0.000000e+00> : vector<8x8xf32>
    %44 = tpu.matmul %41, %42, %cst_27 {dimension_numbers = #tpu.dot_dimension_numbers<[1], [1], [0], [0], [0, 0, 1, 0], [], []>} : vector<8x8xf32>, vector<8x8xf32>, vector<8x8xf32> -> vector<8x8xf32>
    %cst_28 = arith.constant 2.500000e-01 : f32
    %45 = vector.broadcast %cst_28 : f32 to vector<8x8xf32>
    %46 = arith.mulf %44, %45 : vector<8x8xf32>
    %c0_29 = arith.constant 0 : index
    %c1 = arith.constant 1 : index
    %c0_30 = arith.constant 0 : index
    %c0_31 = arith.constant 0 : index
    %47 = vector.load %arg4[%c0_29, %c1, %c0_30, %c0_31] : memref<1x4x8x8xf32, #tpu.memory_space<vmem>>, vector<1x1x8x8xf32>
    %48 = vector.shape_cast %47 : vector<1x1x8x8xf32> to vector<8x8xf32>
    %49 = arith.addf %46, %48 : vector<8x8xf32>
    %cst_32 = arith.constant dense<0xFF800000> : vector<8xf32>
    %50 = vector.multi_reduction <maximumf>, %49, %cst_32 [1] : vector<8x8xf32> to vector<8xf32>
    %51 = vector.shape_cast %50 : vector<8xf32> to vector<8x1xf32>
    %52 = vector.broadcast %51 : vector<8x1xf32> to vector<8x8xf32>
    %53 = arith.subf %49, %52 : vector<8x8xf32>
    %54 = math.exp %53 : vector<8x8xf32>
    %cst_33 = arith.constant dense<0.000000e+00> : vector<8xf32>
    %55 = vector.multi_reduction <add>, %54, %cst_33 [1] : vector<8x8xf32> to vector<8xf32>
    %56 = vector.shape_cast %55 : vector<8xf32> to vector<8x1xf32>
    %57 = vector.broadcast %56 : vector<8x1xf32> to vector<8x8xf32>
    %58 = arith.divf %54, %57 : vector<8x8xf32>
    %cst_34 = arith.constant dense<0.000000e+00> : vector<8x8xf32>
    %59 = tpu.matmul %58, %43, %cst_34 {dimension_numbers = #tpu.dot_dimension_numbers<[1], [0], [0], [1], [0, 0, 1, 1], [], []>} : vector<8x8xf32>, vector<8x8xf32>, vector<8x8xf32> -> vector<8x8xf32>
    %60 = vector.extract_strided_slice %11 {offsets = [0, 16], sizes = [8, 8], strides = [1, 1]} : vector<8x32xf32> to vector<8x8xf32>
    %61 = vector.extract_strided_slice %16 {offsets = [0, 16], sizes = [8, 8], strides = [1, 1]} : vector<8x32xf32> to vector<8x8xf32>
    %62 = vector.extract_strided_slice %21 {offsets = [0, 16], sizes = [8, 8], strides = [1, 1]} : vector<8x32xf32> to vector<8x8xf32>
    %cst_35 = arith.constant dense<0.000000e+00> : vector<8x8xf32>
    %63 = tpu.matmul %60, %61, %cst_35 {dimension_numbers = #tpu.dot_dimension_numbers<[1], [1], [0], [0], [0, 0, 1, 0], [], []>} : vector<8x8xf32>, vector<8x8xf32>, vector<8x8xf32> -> vector<8x8xf32>
    %cst_36 = arith.constant 2.500000e-01 : f32
    %64 = vector.broadcast %cst_36 : f32 to vector<8x8xf32>
    %65 = arith.mulf %63, %64 : vector<8x8xf32>
    %c0_37 = arith.constant 0 : index
    %c2 = arith.constant 2 : index
    %c0_38 = arith.constant 0 : index
    %c0_39 = arith.constant 0 : index
    %66 = vector.load %arg4[%c0_37, %c2, %c0_38, %c0_39] : memref<1x4x8x8xf32, #tpu.memory_space<vmem>>, vector<1x1x8x8xf32>
    %67 = vector.shape_cast %66 : vector<1x1x8x8xf32> to vector<8x8xf32>
    %68 = arith.addf %65, %67 : vector<8x8xf32>
    %cst_40 = arith.constant dense<0xFF800000> : vector<8xf32>
    %69 = vector.multi_reduction <maximumf>, %68, %cst_40 [1] : vector<8x8xf32> to vector<8xf32>
    %70 = vector.shape_cast %69 : vector<8xf32> to vector<8x1xf32>
    %71 = vector.broadcast %70 : vector<8x1xf32> to vector<8x8xf32>
    %72 = arith.subf %68, %71 : vector<8x8xf32>
    %73 = math.exp %72 : vector<8x8xf32>
    %cst_41 = arith.constant dense<0.000000e+00> : vector<8xf32>
    %74 = vector.multi_reduction <add>, %73, %cst_41 [1] : vector<8x8xf32> to vector<8xf32>
    %75 = vector.shape_cast %74 : vector<8xf32> to vector<8x1xf32>
    %76 = vector.broadcast %75 : vector<8x1xf32> to vector<8x8xf32>
    %77 = arith.divf %73, %76 : vector<8x8xf32>
    %cst_42 = arith.constant dense<0.000000e+00> : vector<8x8xf32>
    %78 = tpu.matmul %77, %62, %cst_42 {dimension_numbers = #tpu.dot_dimension_numbers<[1], [0], [0], [1], [0, 0, 1, 1], [], []>} : vector<8x8xf32>, vector<8x8xf32>, vector<8x8xf32> -> vector<8x8xf32>
    %79 = vector.extract_strided_slice %11 {offsets = [0, 24], sizes = [8, 8], strides = [1, 1]} : vector<8x32xf32> to vector<8x8xf32>
    %80 = vector.extract_strided_slice %16 {offsets = [0, 24], sizes = [8, 8], strides = [1, 1]} : vector<8x32xf32> to vector<8x8xf32>
    %81 = vector.extract_strided_slice %21 {offsets = [0, 24], sizes = [8, 8], strides = [1, 1]} : vector<8x32xf32> to vector<8x8xf32>
    %cst_43 = arith.constant dense<0.000000e+00> : vector<8x8xf32>
    %82 = tpu.matmul %79, %80, %cst_43 {dimension_numbers = #tpu.dot_dimension_numbers<[1], [1], [0], [0], [0, 0, 1, 0], [], []>} : vector<8x8xf32>, vector<8x8xf32>, vector<8x8xf32> -> vector<8x8xf32>
    %cst_44 = arith.constant 2.500000e-01 : f32
    %83 = vector.broadcast %cst_44 : f32 to vector<8x8xf32>
    %84 = arith.mulf %82, %83 : vector<8x8xf32>
    %c0_45 = arith.constant 0 : index
    %c3 = arith.constant 3 : index
    %c0_46 = arith.constant 0 : index
    %c0_47 = arith.constant 0 : index
    %85 = vector.load %arg4[%c0_45, %c3, %c0_46, %c0_47] : memref<1x4x8x8xf32, #tpu.memory_space<vmem>>, vector<1x1x8x8xf32>
    %86 = vector.shape_cast %85 : vector<1x1x8x8xf32> to vector<8x8xf32>
    %87 = arith.addf %84, %86 : vector<8x8xf32>
    %cst_48 = arith.constant dense<0xFF800000> : vector<8xf32>
    %88 = vector.multi_reduction <maximumf>, %87, %cst_48 [1] : vector<8x8xf32> to vector<8xf32>
    %89 = vector.shape_cast %88 : vector<8xf32> to vector<8x1xf32>
    %90 = vector.broadcast %89 : vector<8x1xf32> to vector<8x8xf32>
    %91 = arith.subf %87, %90 : vector<8x8xf32>
    %92 = math.exp %91 : vector<8x8xf32>
    %cst_49 = arith.constant dense<0.000000e+00> : vector<8xf32>
    %93 = vector.multi_reduction <add>, %92, %cst_49 [1] : vector<8x8xf32> to vector<8xf32>
    %94 = vector.shape_cast %93 : vector<8xf32> to vector<8x1xf32>
    %95 = vector.broadcast %94 : vector<8x1xf32> to vector<8x8xf32>
    %96 = arith.divf %92, %95 : vector<8x8xf32>
    %cst_50 = arith.constant dense<0.000000e+00> : vector<8x8xf32>
    %97 = tpu.matmul %96, %81, %cst_50 {dimension_numbers = #tpu.dot_dimension_numbers<[1], [0], [0], [1], [0, 0, 1, 1], [], []>} : vector<8x8xf32>, vector<8x8xf32>, vector<8x8xf32> -> vector<8x8xf32>
    %98 = tpu.concatenate %40, %59, %78, %97 in 1 : vector<8x8xf32>, vector<8x8xf32>, vector<8x8xf32>, vector<8x8xf32> -> vector<8x32xf32>
    %c0_51 = arith.constant 0 : index
    %c0_52 = arith.constant 0 : index
    %99 = vector.load %arg8[%c0_51, %c0_52] : memref<32x32xf32, #tpu.memory_space<vmem>>, vector<32x32xf32>
    %cst_53 = arith.constant dense<0.000000e+00> : vector<8x32xf32>
    %100 = tpu.matmul %98, %99, %cst_53 {dimension_numbers = #tpu.dot_dimension_numbers<[1], [0], [0], [1], [0, 0, 1, 1], [], []>} : vector<8x32xf32>, vector<32x32xf32>, vector<8x32xf32> -> vector<8x32xf32>
    %101 = vector.extract_strided_slice %6 {offsets = [3, 0], sizes = [1, 32], strides = [1, 1]} : vector<4x32xf32> to vector<1x32xf32>
    %102 = vector.broadcast %101 : vector<1x32xf32> to vector<8x32xf32>
    %103 = arith.addf %100, %102 : vector<8x32xf32>
    %c0_54 = arith.constant 0 : index
    %c0_55 = arith.constant 0 : index
    %c0_56 = arith.constant 0 : index
    %104 = vector.load %arg10[%c0_54, %c0_55, %c0_56] : memref<1x8x32xf32, #tpu.memory_space<vmem>>, vector<1x8x32xf32>
    %105 = vector.shape_cast %104 : vector<1x8x32xf32> to vector<8x32xf32>
    %106 = vector.shape_cast %103 : vector<8x32xf32> to vector<1x8x32xf32>
    tpu.vector_store %arg10[%c0_54, %c0_55, %c0_56], %106 {strides = array<i32>} : memref<1x8x32xf32, #tpu.memory_space<vmem>>, vector<1x8x32xf32>,
    return
  }
  func.func @transform_0(%arg0: i32) -> (i32, i32, i32) {
    %c0_i32 = arith.constant 0 : i32
    %c0_i32_0 = arith.constant 0 : i32
    %c0_i32_1 = arith.constant 0 : i32
    return %arg0, %c0_i32, %c0_i32_0 : i32, i32, i32
  }
  func.func @transform_1(%arg0: i32) -> (i32, i32, i32) {
    %c0_i32 = arith.constant 0 : i32
    %c0_i32_0 = arith.constant 0 : i32
    %c0_i32_1 = arith.constant 0 : i32
    return %arg0, %c0_i32, %c0_i32_0 : i32, i32, i32
  }
  func.func @transform_2(%arg0: i32) -> (i32, i32, i32) {
    %c0_i32 = arith.constant 0 : i32
    %c0_i32_0 = arith.constant 0 : i32
    %c0_i32_1 = arith.constant 0 : i32
    return %arg0, %c0_i32, %c0_i32_0 : i32, i32, i32
  }
  func.func @transform_3(%arg0: i32) -> (i32, i32, i32, i32) {
    %c0_i32 = arith.constant 0 : i32
    %c0_i32_0 = arith.constant 0 : i32
    %c0_i32_1 = arith.constant 0 : i32
    %c0_i32_2 = arith.constant 0 : i32
    return %arg0, %c0_i32, %c0_i32_0, %c0_i32_1 : i32, i32, i32, i32
  }
  func.func @transform_4(%arg0: i32) -> (i32, i32) {
    %c0_i32 = arith.constant 0 : i32
    %c0_i32_0 = arith.constant 0 : i32
    %c0_i32_1 = arith.constant 0 : i32
    return %c0_i32, %c0_i32_0 : i32, i32
  }
  func.func @transform_5(%arg0: i32) -> (i32, i32) {
    %c0_i32 = arith.constant 0 : i32
    %c0_i32_0 = arith.constant 0 : i32
    %c0_i32_1 = arith.constant 0 : i32
    return %c0_i32, %c0_i32_0 : i32, i32
  }
  func.func @transform_6(%arg0: i32) -> (i32, i32) {
    %c0_i32 = arith.constant 0 : i32
    %c0_i32_0 = arith.constant 0 : i32
    %c0_i32_1 = arith.constant 0 : i32
    return %c0_i32, %c0_i32_0 : i32, i32
  }
  func.func @transform_7(%arg0: i32) -> (i32, i32) {
    %c0_i32 = arith.constant 0 : i32
    %c0_i32_0 = arith.constant 0 : i32
    %c0_i32_1 = arith.constant 0 : i32
    return %c0_i32, %c0_i32_0 : i32, i32
  }
  func.func @transform_8(%arg0: i32) -> (i32, i32) {
    %c0_i32 = arith.constant 0 : i32
    %c0_i32_0 = arith.constant 0 : i32
    %c0_i32_1 = arith.constant 0 : i32
    return %c0_i32, %c0_i32_0 : i32, i32
  }
  func.func @transform_9(%arg0: i32) -> (i32, i32, i32) {
    %c0_i32 = arith.constant 0 : i32
    %c0_i32_0 = arith.constant 0 : i32
    %c0_i32_1 = arith.constant 0 : i32
    return %arg0, %c0_i32, %c0_i32_0 : i32, i32, i32
  }
}

</mosaic_0001>

<bundles_post_ra>
// kernel: tpu_custom_call.1
= control target key start
LH: loop header
LB: loop body
LE: loop exit
PB: predicated region body
PF: predicated region fallthrough
CT: control target
= control target key end

     0   :  { %s2093_s0 = inlined_call_operand.hbm [shape: f32[2,8,32], index: 0, kind: input, shape index: {}]   ;;  %s2094_s1 = inlined_call_operand.hbm [shape: f32[2,8,32], index: 1, kind: input, shape index: {}]   ;;  %s2095_s2 = inlined_call_operand.hbm [shape: f32[2,8,32], index: 2, kind: input, shape index: {}]   ;;  %s2096_s3 = inlined_call_operand.hbm [shape: f32[2,4,8,8], index: 3, kind: input, shape index: {}]   ;;  %s2097_s4 = inlined_call_operand.hbm [shape: f32[32,32], index: 4, kind: input, shape index: {}]   ;;  %s2098_s5 = inlined_call_operand.hbm [shape: f32[32,32], index: 5, kind: input, shape index: {}]   ;;  %s2099_s6 = inlined_call_operand.hbm [shape: f32[32,32], index: 6, kind: input, shape index: {}]   ;;  %s2100_s7 = inlined_call_operand.hbm [shape: f32[32,32], index: 7, kind: input, shape index: {}]   ;;  %s2101_s8 = inlined_call_operand.vmem [shape: f32[4,32], index: 8, kind: input, shape index: {}]   ;;  %s2102_s9 = inlined_call_operand.hbm [shape: f32[2,8,32], index: 9, kind: output, shape index: {}]  }
   0x1   :  { %2116 = sst [smem:[#allocation30_spill]] %s2094_s1 }
   0x2   :  { %2117 = sst [smem:[#allocation31_spill]] %s2097_s4 }
   0x3   :  { %2118 = sst [smem:[#allocation32_spill]] %s2098_s5 }
   0x4   :  { %2119 = sst [smem:[#allocation33_spill]] %s2099_s6 }
   0x5   :  { %2120 = sst [smem:[#allocation34_spill]] %s2100_s7 }
   0x6   :  { %14 = vsyncpa [#allocation3], 0 }
   0x7   :  { %16 = vsyncpa [#allocation3 + $0x1], 0 }
   0x8   :  { %17 = vsyncpa [#allocation6], 0 }
   0x9   :  { %19 = vsyncpa [#allocation6 + $0x1], 0 }
   0xa   :  { %20 = vsyncpa [#allocation9], 0 }
   0xb   :  { %22 = vsyncpa [#allocation9 + $0x1], 0 }
   0xc   :  { %23 = vsyncpa [#allocation12], 0 }
   0xd   :  { %24 = vsyncpa [#allocation15], 0 }
   0xe   :  { %25 = vsyncpa [#allocation4], 0 }
   0xf   :  { %27 = vsyncpa [#allocation4 + $0x1], 0  ;;  %s1748_s30 = smov 0   ;;  %s1750_s10 = smov 0  }
  0x10   :  { %s1752_s11 = smov 0   ;;  %s1754_s12 = smov 0  }
  0x11 LB: > { %2121 = sst [smem:[#allocation24_spill]] %s1672_s30  ;;  %s1769_s13 = sadd.s32 4294967295, %s1684_s12   ;;  %s1684_s12 = sphi %s1754_s12, %s2152_s12   ;;  %s1680_s11 = sphi %s1752_s11, %s2154_s11   ;;  %s1676_s10 = sphi %s1750_s10, %s2156_s10   ;;  %s1672_s30 = sphi %s1748_s30, %s2155_s30  }
  0x12   : > { %2122 = sst [smem:[#allocation25_spill]] %s1680_s11  ;;  %s1182_s14 = sadd.s32 4294967294, %s1684_s12  }
  0x13   : > { %p53_p0 = scmp.ne.s32.totalorder %s1676_s10, %s1672_s30  ;;  %p2111_p1 = scmp.eq.s32.totalorder %s1769_s13, 0 }
  0x14   : > { %p260_p2 = scmp.eq.s32.totalorder %s1769_s13, 1  ;;  %p266_p3 = scmp.eq.s32.totalorder %s1182_s14, 1 }
  0x15   : > { %p1778_p4 = por %p2111_p1, %p53_p0  ;;  %p1183_p5 = scmp.ge.s32.totalorder %s1684_s12, 1 }
  0x16   : > { %p1783_p6 = por %p266_p3, %p53_p0  ;;  %p273_p7 = scmp.lt.s32.totalorder %s1684_s12, 3 }
  0x17   : > { %s2126_s4 = sld [smem:[#allocation31_spill]]  ;;  %s1686_s21 = smov [#allocation10]  }
  0x18   : > { %s2124_s16 = scalar_select %p1783_p6, 1, 0 }
  0x19   : > { %p1791_p8 = pnand %p1183_p5, %p273_p7  ;;  %s286_s22 = sshll.u32 %s1686_s21, 4  ;;  %s287_s22 = int_to_ptr.vmem [resolvable:$true] %s286_s22 }
  0x1a   : > { %2125 = sst [smem:[#allocation26_spill]] %s2124_s16  ;;  %s2103_s27 = smov 128  }
  0x1b   : > { %p1258_p9 = pneg %p1791_p8  ;;  %s2129_s5 = sld [smem:[#allocation32_spill]] }
  0x1c   : > { %s2105_s28 = smov 8   ;;  %s1689_s29 = smov [#allocation11]  }
  0x1d   : > { %s284_s19 = sshll.u32 %s2126_s4, 4  ;;  %p1799_p10 = pnand %p1258_p9, %p2111_p1  ;;  %s285_s19 = int_to_ptr.hbm [resolvable:$true] %s284_s19 }
  0x1e   : > { %s300_s14 = sshll.u32 %s1689_s29, 4  ;;  %s1818_s17 = sadd.s32 1, %s1684_s12   ;;  %s301_s14 = int_to_ptr.vmem [resolvable:$true] %s300_s14 }
  0x1f   : > { %1261 = dma.hbm_to_vmem [thread:$0]  (!%p1799_p10), %s285_s19, 512, %s287_s22, [#allocation9], %s2103_s27, %s2103_s27, %s2105_s28  }
  0x20   : > { %2130 = sst [smem:[#allocation27_spill]] %s1818_s17  ;;  %s40_s18 = sadd.s32 1, %s1680_s11 }
  0x21   : > { %s298_s26 = sshll.u32 %s2129_s5, 4  ;;  %s37_s21 = ssub.s32 %s1684_s12, %s1818_s17  ;;  %s299_s26 = int_to_ptr.hbm [resolvable:$true] %s298_s26 }
  0x22   : > { %1264 = dma.hbm_to_vmem [thread:$0]  (!%p1799_p10), %s299_s26, 512, %s301_s14, [#allocation12], %s2103_s27, %s2103_s27, %s2105_s28  }
  0x23   : > { %p47_p12 = scmp.ne.s32.totalorder %s1680_s11, %s1676_s10  ;;  %p38_p13 = scmp.eq.s32.totalorder %s37_s21, 0 }
  0x24   : > { %p48_p0 = scmp.eq.s32.totalorder %s1684_s12, 0  ;;  %p1292_p5 = scmp.lt.s32.totalorder %s1684_s12, 2 }
  0x25   : > { %p1828_p3 = por %p260_p2, %p47_p12  ;;  %s1837_s24 = sand.u32 1, %s1680_s11  }
  0x26   : > { %s1834_s22 = scalar_select %p38_p13, %s1680_s11, %s40_s18  }
  0x27   : > { %s2131_s19 = scalar_select %p1828_p3, 1, 0 }
  0x28   : > { %2133 = sst [smem:[#allocation29_spill]] %s1834_s22  ;;  %p49_p7 = por %p48_p0, %p47_p12 }
  0x29   : > { %2132 = sst [smem:[#allocation28_spill]] %s2131_s19  ;;  %s1840_s25 = sshll.u32 %s1837_s24, 3 }
  0x2a   : > { %s1843_s26 = sshll.u32 %s1684_s12, 3  ;;  %p1845_p9 = pnand %p1292_p5, %p49_p7 }
  0x2b   : > { %s2112_s14 = sand.u32 1, %s1684_s12   ;;  %s2135_s1 = sld [smem:[#allocation30_spill]] }
  0x2c   : > { %s368_s4 = scalar_lea.vmem [#allocation5], %s1840_s25  ;;  %s1857_s22 = scalar_lea.sflag [#allocation6], %s2112_s14 }
  0x2d   : > { %s376_s5 = sshll.u32 %s368_s4, 4  ;;  %p1422_p12 = pneg %p1845_p9  ;;  %s377_s5 = int_to_ptr.vmem [resolvable:$true] %s376_s5 }
  0x31   : > { %s372_s27 = scalar_lea.hbm %s2135_s1, %s1843_s26 }
  0x32   : > { %s374_s28 = sshll.u32 %s372_s27, 4  ;;  %s1425_s27 = scalar_lea.hbm %s2135_s1, 16  ;;  %s375_s28 = int_to_ptr.hbm [resolvable:$true] %s374_s28 }
  0x33   : > { %s1418_s11 = sshra.s32 %s375_s28, 4  ;;  %s1419_s11 = int_to_ptr.hbm [resolvable:$true] %s1418_s11 }
  0x34   : > { %s1420_s17 = scalar_lea.hbm %s1419_s11, 8  ;;  %p1426_p5 = scmp.lt.s32.totalorder %s1419_s11, %s2135_s1 }
  0x35   : > { %p1421_p2 = scmp.ne.s32.totalorder %s1419_s11, %s1420_s17  ;;  %p1427_p7 = scmp.lt.s32.totalorder %s1425_s27, %s1420_s17 }
  0x37   : > { %p1423_p13 = pnand %p1422_p12, %p1421_p2  ;;  %p1428_p11 = por %p1427_p7, %p1426_p5 }
  0x39   : > { %p1424_p0 = pneg %p1423_p13 }
  0x3b   : > { %p1429_p1 = pnand %p1428_p11, %p1424_p0 }
  0x3d   : > { %1432 = shalt.err (!%p1429_p1)
}
  0x3e   : > { %1277 = dma.hbm_to_vmem [thread:$0]  (!%p1845_p9), %s375_s28, 128, %s377_s5, %s1857_s22  }
  0x3f   : > { %s1195_s14 = sshll.u32 %s1837_s24, 5  ;;  %s2136_s6 = sld [smem:[#allocation33_spill]] }
  0x40   : > { %s1877_s16 = scalar_lea.vmem [#allocation8], %s1195_s14  ;;  %s1690_s17 = smov [#allocation13]  }
  0x41   : > { %s314_s27 = sshll.u32 %s1690_s17, 4  ;;  %s2137_s7 = sld [smem:[#allocation34_spill]]  ;;  %s315_s27 = int_to_ptr.vmem [resolvable:$true] %s314_s27 }
  0x42   : > { %s2138_s5 = smov 8   ;;  %s2139_s28 = smov 128  }
  0x43   : > { %s1691_s30 = smov [#allocation14]   ;;  %s349_s17 = scalar_lea.vmem [#allocation2], %s1840_s25 }
  0x44   : > { %s328_s14 = sshll.u32 %s1691_s30, 4  ;;  %s357_s4 = sshll.u32 %s349_s17, 4  ;;  %s329_s14 = int_to_ptr.vmem [resolvable:$true] %s328_s14  ;;  %s358_s4 = int_to_ptr.vmem [resolvable:$true] %s357_s4 }
  0x45   : > { %s312_s18 = sshll.u32 %s2136_s6, 4  ;;  %s353_s6 = scalar_lea.hbm %s2093_s0, %s1843_s26  ;;  %s313_s18 = int_to_ptr.hbm [resolvable:$true] %s312_s18 }
  0x46   : > { %1267 = dma.hbm_to_vmem [thread:$0]  (!%p1799_p10), %s313_s18, 512, %s315_s27, [#allocation12], %s2139_s28, %s2139_s28, %s2138_s5  }
  0x47   : > { %s326_s19 = sshll.u32 %s2137_s7, 4  ;;  %s355_s1 = sshll.u32 %s353_s6, 4  ;;  %s327_s19 = int_to_ptr.hbm [resolvable:$true] %s326_s19  ;;  %s356_s1 = int_to_ptr.hbm [resolvable:$true] %s355_s1 }
  0x48   : > { %1270 = dma.hbm_to_vmem [thread:$0]  (!%p1799_p10), %s327_s19, 512, %s329_s14, [#allocation15], %s2139_s28, %s2139_s28, %s2138_s5  }
  0x49   : > { %s346_s7 = scalar_lea.sflag [#allocation3], %s1837_s24  ;;  %s1508_s18 = sshra.s32 %s356_s1, 4  ;;  %s1509_s18 = int_to_ptr.hbm [resolvable:$true] %s1508_s18 }
  0x4a   : > { %s1510_s27 = scalar_lea.hbm %s1509_s18, 8  ;;  %s1515_s30 = scalar_lea.hbm %s2093_s0, 16 }
  0x4b   : > { %p1511_p1 = scmp.ne.s32.totalorder %s1509_s18, %s1510_s27  ;;  %p1516_p10 = scmp.lt.s32.totalorder %s1509_s18, %s2093_s0 }
  0x4c   : > { %p1517_p13 = scmp.lt.s32.totalorder %s1515_s30, %s1510_s27 }
  0x4d   : > { %p1513_p11 = pnand %p1511_p1, %p1422_p12 }
  0x4e   : > { %p1518_p0 = por %p1517_p13, %p1516_p10 }
  0x4f   : > { %p1514_p2 = pneg %p1513_p11 }
  0x51   : > { %p1519_p5 = pnand %p1518_p0, %p1514_p2 }
  0x53   : > { %1522 = shalt.err (!%p1519_p5)
}
  0x54   : > { %1274 = dma.hbm_to_vmem [thread:$0]  (!%p1845_p9), %s356_s1, 128, %s358_s4, %s346_s7  }
  0x55   : > { %s391_s14 = scalar_lea.hbm %s2095_s2, %s1843_s26  ;;  %s387_s11 = scalar_lea.vmem [#allocation7], %s1840_s25 }
  0x56   : > { %s393_s17 = sshll.u32 %s391_s14, 4  ;;  %s395_s23 = sshll.u32 %s387_s11, 4  ;;  %s394_s17 = int_to_ptr.hbm [resolvable:$true] %s393_s17  ;;  %s396_s23 = int_to_ptr.vmem [resolvable:$true] %s395_s23 }
  0x57   : > { %s1538_s18 = sshra.s32 %s394_s17, 4  ;;  %s1545_s7 = scalar_lea.hbm %s2095_s2, 16  ;;  %s1539_s18 = int_to_ptr.hbm [resolvable:$true] %s1538_s18 }
  0x58   : > { %s1540_s27 = scalar_lea.hbm %s1539_s18, 8  ;;  %p1546_p2 = scmp.lt.s32.totalorder %s1539_s18, %s2095_s2 }
  0x59   : > { %p1541_p7 = scmp.ne.s32.totalorder %s1539_s18, %s1540_s27  ;;  %p1547_p10 = scmp.lt.s32.totalorder %s1545_s7, %s1540_s27 }
  0x5b   : > { %p1543_p1 = pnand %p1541_p7, %p1422_p12  ;;  %p1548_p13 = por %p1547_p10, %p1546_p2 }
  0x5d   : > { %p1544_p11 = pneg %p1543_p1 }
  0x5f   : > { %p1549_p0 = pnand %p1548_p13, %p1544_p11 }
  0x61   : > { %1552 = shalt.err (!%p1549_p0)
}
  0x62   : > { %1280 = dma.hbm_to_vmem [thread:$0]  (!%p1845_p9), %s394_s17, 128, %s396_s23, %s1857_s22  }
  0x63   : > { %s1231_s25 = sshll.u32 %s1684_s12, 5  ;;  %s2140_s26 = sshll.u32 %s1877_s16, 4  ;;  %s415_s26 = int_to_ptr.vmem [resolvable:$true] %s2140_s26 }
  0x64   : > { %s411_s24 = scalar_lea.hbm %s2096_s3, %s1231_s25  ;;  %s2141_s11 = sand.u32 1, %s1684_s12  }
  0x65   : > { %s412_s14 = sshll.u32 %s411_s24, 4  ;;  %s403_s18 = scalar_lea.sflag [#allocation9], %s2141_s11  ;;  %s413_s14 = int_to_ptr.hbm [resolvable:$true] %s412_s14 }
  0x66   : > { %s1568_s27 = sshra.s32 %s413_s14, 4  ;;  %s1575_s16 = scalar_lea.hbm %s2096_s3, 64  ;;  %s1569_s27 = int_to_ptr.hbm [resolvable:$true] %s1568_s27 }
  0x67   : > { %s1570_s30 = scalar_lea.hbm %s1569_s27, 32  ;;  %p1576_p11 = scmp.lt.s32.totalorder %s1569_s27, %s2096_s3 }
  0x68   : > { %p1571_p5 = scmp.ne.s32.totalorder %s1569_s27, %s1570_s30  ;;  %p1577_p2 = scmp.lt.s32.totalorder %s1575_s16, %s1570_s30 }
  0x6a   : > { %p1573_p7 = pnand %p1571_p5, %p1422_p12  ;;  %p1578_p10 = por %p1577_p2, %p1576_p11 }
  0x6c   : > { %p1574_p1 = pneg %p1573_p7 }
  0x6e   : > { %p1579_p13 = pnand %p1578_p10, %p1574_p1 }
  0x70   : > { %1582 = shalt.err (!%p1579_p13)
}
  0x71   : > { %1283 = dma.hbm_to_vmem [thread:$0]  (!%p1845_p9), %s413_s14, 512, %s415_s26, %s403_s18, %s2139_s28, %s2139_s28, %s2138_s5  }
  0x72   : > { %426 = sbr.rel (%p1791_p8) target bundleno = 1182 (0x49e), region = 56  ;;  %s1952_s7 = sand.u32 (!%p1791_p8), 1, %s1676_s10  }
  0x73   : > { %s1955_s1 = sshll.u32 (!%p1791_p8), %s1952_s7, 3  ;;  %s429_s4 = scalar_lea.sflag (!%p1791_p8), [#allocation3], %s1952_s7 }
  0x74   : > { %s432_s25 = scalar_lea.vmem (!%p1791_p8), [#allocation2], %s1955_s1 }
  0x77   : > { %1643 = dma.done.wait (%p1778_p4), %s429_s4, 128  }
  0x78   : > { %1645 = vsyncadd (%p1778_p4), %s429_s4, 4294967168  ;;  %s438_s20 = sand.u32 1, %s1769_s13   ;;  %s442_s5 = scalar_lea.vmem [#allocation5], %s1955_s1 }
  0x79   : > { %s439_s29 = scalar_lea.sflag [#allocation6], %s438_s20 }
  0x7a   : > { %1647 = dma.done.wait (%p1778_p4), %s439_s29, 256  }
  0x7b   : > { %1649 = vsyncadd (%p1778_p4), %s439_s29, 4294967040  ;;  %s1202_s28 = sshll.u32 %s1952_s7, 5  ;;  %s452_s26 = scalar_lea.vmem [#allocation7], %s1955_s1 }
  0x7c   : > { %s459_s19 = scalar_lea.sflag [#allocation9], %s438_s20  ;;  %s1971_s6 = scalar_lea.vmem [#allocation8], %s1202_s28 }
  0x7d   : > { %1651 = dma.done.wait (%p1778_p4), %s459_s19, 512  }
  0x7e   : > { %1653 = vsyncadd (%p1778_p4), %s459_s19, 4294966784  ;;  %p2142_p8 = scmp.eq.s32.totalorder %s1769_s13, 0 }
  0x80   : > { %1655 = dma.done.wait (%p2142_p8), [#allocation9], 512   ;;  %p2143_p9 = pmov %p2142_p8 }
  0x81   : > { %p2144_p12 = pmov %p2142_p8 }
  0x82   : > { %1657 = vsyncadd (%p2143_p9), [#allocation9], 4294966784 }
  0x83   : > { %1659 = dma.done.wait (%p2144_p12), [#allocation12], 1024   ;;  %p2145_p0 = pmov %p2142_p8 }
  0x85   : > { %1661 = vsyncadd (%p2145_p0), [#allocation12], 4294966272  ;;  %p2146_p5 = pmov %p2145_p0 }
  0x86   : > { %p2147_p7 = pmov %p2145_p0 }
  0x87   : > { %1663 = dma.done.wait (%p2146_p5), [#allocation15], 512  }
  0x88   : > { %1665 = vsyncadd (%p2147_p7), [#allocation15], 4294966784  ;;  %v569_v0 = vld [vmem:[#allocation11 + $0x18] sm:$0xff]  ;;  %v568_v1 = vld [vmem:[#allocation11 + $0x10] sm:$0xff]  ;;  %vm542_vm0 = vcmask 261120   ;;  %vm622_vm1 = vcmask 64512  }
  0x89   : > { %v540_v2 = vld [vmem:[#allocation10 + $0x18] sm:$0xff]  ;;  %586 = vmatpush.msra.mxu1 %v569_v0  ;;  %v539_v3 = vld [vmem:[#allocation10 + $0x10] sm:$0xff]  ;;  %v567_v4 = vld [vmem:[#allocation11 + $0x8] sm:$0xff]  ;;  %s1692_s14 = smov 104   ;;  %s1693_s11 = smov 120  }
  0x8a   : > { %558 = vmatpush.msra.mxu0 %v540_v2  ;;  %v538_v5 = vld [vmem:[#allocation10 + $0x8] sm:$0xff]  ;;  %v566_v6 = vld [vmem:[#allocation11] sm:$0xff]  ;;  %v533_v9 = vld [vmem:[%s432_s25] sm:$0xff]  ;;  %s1694_s18 = smov 112   ;;  %s1695_s27 = smov 8  }
  0x8b   : > { %587 = vmatpush.msra.mxu1 %v568_v1  ;;  %v537_v7 = vld [vmem:[#allocation10] sm:$0xff]  ;;  %v1996_v10 = vld [vmem:[%s2101_s8] sm:$0xf]  ;;  %v597_v17 = vld [vmem:[#allocation13 + $0x18] sm:$0xff]  ;;  %s1696_s30 = smov 16   ;;  %s1697_s22 = smov 24  }
  0x8c   : > { %559 = vmatpush.msra.mxu0 %v539_v3  ;;  %v534_v8 = vld [vmem:[%s442_s5] sm:$0xff]  ;;  %v570_v11 = vperm.slane %v1996_v10, 1  ;;  %v541_v12 = vperm.slane %v1996_v10, 0  ;;  %v596_v18 = vld [vmem:[#allocation13 + $0x10] sm:$0xff]  ;;  %614 = vmatpush.msra.mxu2 %v597_v17  ;;  %v598_v33 = vperm.slane %v1996_v10, 2  ;;  %v1224_v51 = vld [vmem:[%s1971_s6 + $0x18] sm:$0xff] }
  0x8d   : > { %588 = vmatpush.msra.mxu1 %v567_v4  ;;  %v595_v19 = vld [vmem:[#allocation13 + $0x8] sm:$0xff]  ;;  %v594_v20 = vld [vmem:[#allocation13] sm:$0xff]  ;;  %v535_v21 = vld [vmem:[%s452_s26] sm:$0xff]  ;;  %s1228_s17 = sshll.u32 %s1769_s13, 3  ;;  %s532_s25 = scalar_lea.vmem [#allocation16], %s1955_s1 }
  0x8e   : > { %560 = vmatpush.msra.mxu0 %v538_v5  ;;  %615 = vmatpush.msra.mxu2 %v596_v18  ;;  %v650_v29 = vld [vmem:[%s1971_s6] sm:$0xff]  ;;  %v1216_v37 = vld [vmem:[%s1971_s6 + $0x8] sm:$0xff]  ;;  %v1220_v42 = vld [vmem:[%s1971_s6 + $0x10] sm:$0xff]  ;;  %s1003_s4 = scalar_lea.hbm %s2102_s9, %s1228_s17  ;;  %s1005_s20 = sshll.u32 %s532_s25, 4  ;;  %s1006_s20 = int_to_ptr.vmem [resolvable:$true] %s1005_s20 }
  0x8f   : > { %589 = vmatpush.msra.mxu1 %v566_v6  ;;  %s1007_s29 = sshll.u32 %s1003_s4, 4  ;;  %s993_s5 = scalar_lea.sflag [#allocation4], %s1952_s7  ;;  %s1008_s29 = int_to_ptr.hbm [resolvable:$true] %s1007_s29 }
  0x90   : > { %561 = vmatpush.msra.mxu0 %v537_v7  ;;  %1209 = vmatmul.msk.f32.vlgmr.msra.gmra.mxu1 %vm542_vm0, %v534_v8  ;;  %s1612_s28 = sshra.s32 %s1008_s29, 4  ;;  %s1618_s1 = scalar_lea.hbm %s2102_s9, 16  ;;  %s1613_s28 = int_to_ptr.hbm [resolvable:$true] %s1612_s28 }
  0x91   : > { %1208 = vmatmul.msk.f32.vlgmr.msra.gmra.mxu0 %vm542_vm0, %v533_v9  ;;  %616 = vmatpush.msra.mxu2 %v595_v19  ;;  %s1614_s13 = scalar_lea.hbm %s1613_s28, 8  ;;  %p1619_p2 = scmp.lt.s32.totalorder %s1613_s28, %s2102_s9 }
  0x92   : > { %p1615_p4 = scmp.ne.s32.totalorder %s1613_s28, %s1614_s13  ;;  %p1620_p10 = scmp.lt.s32.totalorder %s1618_s1, %s1614_s13 }
  0x93   : > { %617 = vmatpush.msra.mxu2 %v594_v20 }
  0x94   : > { %1210 = vmatmul.msk.f32.vlgmr.msra.gmra.mxu2 %vm542_vm0, %v535_v21  ;;  %p1616_p1 = pnand %p1615_p4, %p1828_p3  ;;  %p1621_p13 = por %p1620_p10, %p1619_p2 }
  0x96   : > { %p1617_p11 = pneg %p1616_p1 }
  0x98   : > { %p1622_p8 = pnand %p1621_p13, %p1617_p11 }
 0x10d   : > { %v591_v13 = vpop.f32.mrf.mxu1 }
 0x10e   : > { %v563_v14 = vpop.f32.mrf.mxu0  ;;  %v592_v15 = vadd.f32 %v591_v13, %v570_v11 }
 0x10f   : > { %v564_v16 = vadd.f32 %v563_v14, %v541_v12 }
 0x110   : > { %866 = vrot.lane.b32.xlu2 %v592_v15, %s1692_s14  ;;  %701 = vrot.lane.b32.xlu1 %v592_v15, %s1693_s11 }
 0x111   : > { %784 = vrot.lane.b32.xlu0 %v592_v15, %s1694_s18  ;;  %1211 = vmatpush.xpose.msk.msra.mxu3 %vm622_vm1, %v592_v15 }
 0x114   : > { %1212 = vmatmul.msk.f32.vlgmr.msra.gmra.mxu3 %vm622_vm1, %v564_v16 }
 0x117   : > { %v619_v34 = vpop.f32.mrf.mxu2 }
 0x118   : > { %864 = vrot.lane.b32.xlu2 %v564_v16, %s1692_s14  ;;  %699 = vrot.lane.b32.xlu1 %v564_v16, %s1693_s11  ;;  %v2020_v35 = vadd.f32 %v619_v34, %v598_v33 }
 0x119   : > { %782 = vrot.lane.b32.xlu0 %v564_v16, %s1694_s18 }
 0x11a   : > { %694 = vmatpush.msrb.mxu3 %v2020_v35 }
 0x16a   : > { %v867_v23 = vpop.permute.xlu2 %866 }
 0x172   : > { %v865_v27 = vpop.permute.xlu2 %864 }
 0x182   : > { %v702_v22 = vpop.permute.xlu1 %701 }
 0x183   : > { %v785_v24 = vpop.permute.xlu0 %784  ;;  %1214 = vmatpush.xpose.msk.msrb.mxu0 %vm622_vm1, %v702_v22 }
 0x184   : > { %1218 = vmatpush.xpose.msk.msrb.mxu2 %vm622_vm1, %v785_v24 }
 0x187   : > { %1222 = vmatpush.xpose.msk.msra.mxu0 %vm622_vm1, %v867_v23 }
 0x18a   : > { %v700_v25 = vpop.permute.xlu1 %699 }
 0x18b   : > { %v783_v26 = vpop.permute.xlu0 %782  ;;  %1215 = vmatmul.msk.f32.vlgmr.msrb.gmra.mxu0 %vm622_vm1, %v700_v25 }
 0x18c   : > { %1219 = vmatmul.msk.f32.vlgmr.msrb.gmra.mxu2 %vm622_vm1, %v783_v26 }
 0x193   : > { %1223 = vmatmul.msk.f32.vlgmr.msra.gmra.mxu0 %vm622_vm1, %v865_v27 }
 0x197   : > { %v646_v28 = vpop.f32.mrf.mxu3 }
 0x198   : > { %v649_v30 = vmul.f32 0.25, %v646_v28 }
 0x19a   : > { %v651_v31 = vadd.f32 %v650_v29, %v649_v30 }
 0x19c   : > { %v652_v32 = vsel %vm622_vm1, %v651_v31, -inf }
 0x19d   : > { %653 = vmax.xlane.f32.xlu0 %v652_v32 }
 0x208   : > { %v724_v36 = vpop.f32.mrf.mxu0 }
 0x209   : > { %v727_v38 = vmul.f32 0.25, %v724_v36 }
 0x20b   : > { %v730_v39 = vadd.f32 %v1216_v37, %v727_v38 }
 0x20d   : > { %v731_v40 = vsel %vm622_vm1, %v730_v39, -inf }
 0x20e   : > { %732 = vmax.xlane.f32.xlu1 %v731_v40 }
 0x20f   : > { %v807_v41 = vpop.f32.mrf.mxu2 }
 0x210   : > { %v810_v43 = vmul.f32 0.25, %v807_v41  ;;  %v654_v44 = vpop.xlane.xlu0 %653  ;;  %v889_v46 = vpop.f32.mrf.mxu0 }
 0x211   : > { %v655_v45 = vsub.f32 %v651_v31, %v654_v44  ;;  %v892_v49 = vmul.f32 0.25, %v889_v46 }
 0x212   : > { %v813_v47 = vadd.f32 %v1220_v42, %v810_v43 }
 0x213   : > { %v656_v48 = vmul.f32 1.442695, %v655_v45  ;;  %v895_v52 = vadd.f32 %v1224_v51, %v892_v49 }
 0x214   : > { %v814_v50 = vsel %vm622_vm1, %v813_v47, -inf }
 0x215   : > { %1342 = vpow2.f32 %v656_v48  ;;  %815 = vmax.xlane.f32.xlu2 %v814_v50  ;;  %v896_v54 = vsel %vm622_vm1, %v895_v52, -inf }
 0x21b   : > { %v1343_v53 = vpop.eup %1342 }
 0x21c   : > { %v658_v55 = vsel %vm622_vm1, %v1343_v53, 0.0 }
 0x21d   : > { %897 = vmax.xlane.f32.xlu2 %v896_v54  ;;  %659 = vadd.xlane.f32.xlu0 %v658_v55 }
 0x281   : > { %v733_v56 = vpop.xlane.xlu1 %732 }
 0x282   : > { %v734_v57 = vsub.f32 %v730_v39, %v733_v56 }
 0x284   : > { %v735_v58 = vmul.f32 1.442695, %v734_v57 }
 0x286   : > { %1344 = vpow2.f32 %v735_v58 }
 0x288   : > { %v816_v59 = vpop.xlane.xlu2 %815 }
 0x289   : > { %v817_v60 = vsub.f32 %v813_v47, %v816_v59 }
 0x28b   : > { %v818_v61 = vmul.f32 1.442695, %v817_v60 }
 0x28c   : > { %v2030_v62 = vpop.eup %1344 }
 0x28d   : > { %1346 = vpow2.f32 %v818_v61  ;;  %v737_v63 = vsel %vm622_vm1, %v2030_v62, 0.0 }
 0x28e   : > { %738 = vadd.xlane.f32.xlu1 %v737_v63  ;;  %v966_v63 = vld [vmem:[#allocation14 + $0x18] sm:$0xff] }
 0x28f   : > { %983 = vmatpush.msra.mxu2 %v966_v63 }
 0x290   : > { %v898_v0 = vpop.xlane.xlu2 %897  ;;  %v660_v1 = vpop.xlane.xlu0 %659 }
 0x291   : > { %v899_v2 = vsub.f32 %v895_v52, %v898_v0  ;;  %1348 = vrcp.f32 %v660_v1  ;;  %v672_v11 = vand.u32 2147483648, %v660_v1  ;;  %v670_v13 = vand.u32 2147483647, %v660_v1  ;;  %v965_v0 = vld [vmem:[#allocation14 + $0x10] sm:$0xff] }
 0x292   : > { %vm666_vm3 = vweird.f32 %v660_v1  ;;  %984 = vmatpush.msra.mxu2 %v965_v0 }
 0x293   : > { %v2034_v3 = vpop.eup %1346  ;;  %v900_v4 = vmul.f32 1.442695, %v899_v2  ;;  %v673_v16 = vor.u32 1.1754944e-38, %v672_v11  ;;  %vm671_vm5 = vcmp.eq.f32.partialorder %v670_v13, 8.507059e+37  ;;  %v963_v2 = vld [vmem:[#allocation14] sm:$0xff] }
 0x294   : > { %v820_v5 = vsel %vm622_vm1, %v2034_v3, 0.0 }
 0x295   : > { %1350 = vpow2.f32 %v900_v4  ;;  %821 = vadd.xlane.f32.xlu2 %v820_v5 }
 0x297   : > { %v1349_v6 = vpop.eup %1348 }
 0x298   : > { %v662_v7 = vmul.f32 %v1349_v6, %v660_v1  ;;  %vm667_vm2 = vweird.f32 %v1349_v6  ;;  %v964_v1 = vld [vmem:[#allocation14 + $0x8] sm:$0xff] }
 0x299   : > { %vm668_vm4 = vmor %vm666_vm3, %vm667_vm2  ;;  %985 = vmatpush.msra.mxu2 %v964_v1 }
 0x29a   : > { %v663_v8 = vsub.f32 1.0, %v662_v7 }
 0x29b   : > { %v2038_v9 = vpop.eup %1350  ;;  %986 = vmatpush.msra.mxu2 %v963_v2 }
 0x29c   : > { %v664_v12 = vmul.f32 %v1349_v6, %v663_v8  ;;  %v902_v14 = vsel %vm622_vm1, %v2038_v9, 0.0 }
 0x29d   : > { %903 = vadd.xlane.f32.xlu0 %v902_v14 }
 0x29e   : > { %v665_v15 = vadd.f32 %v1349_v6, %v664_v12 }
 0x2a0   : > { %v669_v17 = vsel %vm668_vm4, %v1349_v6, %v665_v15  ;;  %vm959_vm4 = vcmask 130048  }
 0x2a1   : > { %v674_v18 = vsel %vm671_vm5, %v673_v16, %v669_v17  ;;  %vm961_vm5 = vcmask 195584  }
 0x2a2   : > { %v675_v19 = vmul.f32 %v1343_v53, %v674_v18 }
 0x2a4   : > { %1213 = vmatmul.msk.f32.vlgmr.msrb.gmra.mxu3 %vm622_vm1, %v675_v19 }
 0x2a7   : > { %756 = vrot.lane.b32.xlu1 %v2020_v35, %s1693_s11 }
 0x2ad   : > { %838 = vrot.lane.b32.xlu2 %v2020_v35, %s1694_s18 }
 0x2b1   : > { %920 = vrot.lane.b32.xlu0 %v2020_v35, %s1692_s14 }
 0x301   : > { %v739_v20 = vpop.xlane.xlu1 %738 }
 0x302   : > { %1352 = vrcp.f32 %v739_v20  ;;  %v751_v28 = vand.u32 2147483648, %v739_v20  ;;  %vm745_vm7 = vweird.f32 %v739_v20  ;;  %v749_v32 = vand.u32 2147483647, %v739_v20 }
 0x304   : > { %v752_v36 = vor.u32 1.1754944e-38, %v751_v28  ;;  %vm750_vm10 = vcmp.eq.f32.partialorder %v749_v32, 8.507059e+37 }
 0x308   : > { %v1353_v21 = vpop.eup %1352  ;;  %v822_v22 = vpop.xlane.xlu2 %821 }
 0x309   : > { %v741_v23 = vmul.f32 %v1353_v21, %v739_v20  ;;  %1354 = vrcp.f32 %v822_v22  ;;  %vm746_vm6 = vweird.f32 %v1353_v21  ;;  %v834_v34 = vand.u32 2147483648, %v822_v22 }
 0x30a   : > { %vm747_vm8 = vmor %vm745_vm7, %vm746_vm6  ;;  %v832_v38 = vand.u32 2147483647, %v822_v22  ;;  %vm828_vm11 = vweird.f32 %v822_v22 }
 0x30b   : > { %v742_v24 = vsub.f32 1.0, %v741_v23  ;;  %v835_v42 = vor.u32 1.1754944e-38, %v834_v34 }
 0x30c   : > { %vm833_vm13 = vcmp.eq.f32.partialorder %v832_v38, 8.507059e+37 }
 0x30d   : > { %v743_v25 = vmul.f32 %v1353_v21, %v742_v24 }
 0x30f   : > { %v1355_v26 = vpop.eup %1354  ;;  %v744_v27 = vadd.f32 %v1353_v21, %v743_v25 }
 0x310   : > { %v824_v29 = vmul.f32 %v1355_v26, %v822_v22  ;;  %v839_v30 = vpop.permute.xlu2 %838  ;;  %v904_v31 = vpop.xlane.xlu0 %903  ;;  %vm829_vm9 = vweird.f32 %v1355_v26 }
 0x311   : > { %1356 = vrcp.f32 %v904_v31  ;;  %859 = vmatpush.msra.mxu3 %v839_v30  ;;  %v748_v35 = vsel %vm747_vm8, %v1353_v21, %v744_v27  ;;  %vm830_vm12 = vmor %vm828_vm11, %vm829_vm9  ;;  %v916_v50 = vand.u32 2147483648, %v904_v31  ;;  %v914_v52 = vand.u32 2147483647, %v904_v31 }
 0x312   : > { %v825_v33 = vsub.f32 1.0, %v824_v29  ;;  %v753_v40 = vsel %vm750_vm10, %v752_v36, %v748_v35  ;;  %vm910_vm15 = vweird.f32 %v904_v31 }
 0x313   : > { %v754_v47 = vmul.f32 %v2030_v62, %v753_v40  ;;  %v917_v54 = vor.u32 1.1754944e-38, %v916_v50  ;;  %vm915_vm3 = vcmp.eq.f32.partialorder %v914_v52, 8.507059e+37 }
 0x314   : > { %v826_v37 = vmul.f32 %v1355_v26, %v825_v33 }
 0x316   : > { %v827_v39 = vadd.f32 %v1355_v26, %v826_v37 }
 0x317   : > { %v1357_v41 = vpop.eup %1356 }
 0x318   : > { %v831_v43 = vsel %vm830_vm12, %v1355_v26, %v827_v39  ;;  %v906_v44 = vmul.f32 %v1357_v41, %v904_v31  ;;  %vm911_vm14 = vweird.f32 %v1357_v41 }
 0x319   : > { %v836_v45 = vsel %vm833_vm13, %v835_v42, %v831_v43  ;;  %v757_v46 = vpop.permute.xlu1 %756  ;;  %vm912_vm2 = vmor %vm910_vm15, %vm911_vm14 }
 0x31a   : > { %v907_v48 = vsub.f32 1.0, %v906_v44  ;;  %777 = vmatpush.msrb.mxu1 %v757_v46  ;;  %v837_v49 = vmul.f32 %v2034_v3, %v836_v45 }
 0x31b   : > { %1217 = vmatmul.msk.f32.vlgmr.msrb.gmra.mxu1 %vm622_vm1, %v754_v47 }
 0x31c   : > { %v908_v51 = vmul.f32 %v1357_v41, %v907_v48  ;;  %1221 = vmatmul.msk.f32.vlgmr.msra.gmra.mxu3 %vm622_vm1, %v837_v49 }
 0x31e   : > { %v909_v53 = vadd.f32 %v1357_v41, %v908_v51 }
 0x320   : > { %v913_v55 = vsel %vm912_vm2, %v1357_v41, %v909_v53 }
 0x321   : > { %v918_v56 = vsel %vm915_vm3, %v917_v54, %v913_v55 }
 0x322   : > { %v919_v57 = vmul.f32 %v2038_v9, %v918_v56  ;;  %v967_v9 = vperm.slane %v1996_v10, 3 }
 0x323   : > { %v921_v58 = vpop.permute.xlu0 %920 }
 0x324   : > { %941 = vmatpush.msra.mxu1 %v921_v58 }
 0x325   : > { %1225 = vmatmul.msk.f32.vlgmr.msra.gmra.mxu1 %vm622_vm1, %v919_v57 }
 0x327   : > { %v696_v59 = vpop.f32.mrf.mxu3 }
 0x398   : > { %v779_v60 = vpop.f32.mrf.mxu1 }
 0x399   : > { %947 = vrot.lane.b32.xlu1 %v779_v60, %s1695_s27 }
 0x39f   : > { %v861_v61 = vpop.f32.mrf.mxu3 }
 0x3a0   : > { %951 = vrot.lane.b32.xlu0 %v861_v61, %s1696_s30 }
 0x3a2   : > { %v943_v62 = vpop.f32.mrf.mxu1 }
 0x3a3   : > { %955 = vrot.lane.b32.xlu2 %v943_v62, %s1697_s22 }
 0x3fd   : > { %v956_v6 = vpop.permute.xlu2 %955 }
 0x40b   : > { %v948_v3 = vpop.permute.xlu1 %947 }
 0x40c   : > { %v958_v4 = vsel %vm622_vm1, %v696_v59, %v948_v3 }
 0x412   : > { %v952_v5 = vpop.permute.xlu0 %951 }
 0x413   : > { %v960_v7 = vsel %vm959_vm4, %v958_v4, %v952_v5 }
 0x414   : > { %v962_v8 = vsel %vm961_vm5, %v960_v7, %v956_v6 }
 0x415   : > { %1226 = vmatmul.msk.f32.vlgmr.msra.gmra.mxu2 %vm542_vm0, %v962_v8 }
 0x498   : > { %v988_v11 = vpop.f32.mrf.mxu2 }
 0x499   : > { %v989_v12 = vadd.f32 %v988_v11, %v967_v9 }
 0x49b   : > { %991 = vst.msk [vmem:[%s532_s25] sm:$0xff] %vm542_vm0, %v989_v12 }
 0x49c   : > { %1625 = shalt.err (!%p1622_p8)
}
 0x49d   : > { %1256 = dma.vmem_to_hbm [thread:$0]  (%p1828_p3), %s1006_s20, 128, %s1008_s29, %s993_s5  }
 0x49e PF: > { %s2149_s7 = sld [smem:[#allocation24_spill]]  ;;  %p2151_p9 = scmp.ge.s32.totalorder %s1684_s12, 2 }
 0x4a0   : > { %p1285_p12 = pnand %p2151_p9, %p1783_p6 }
 0x4a2   : > { %p1286_p0 = pneg %p1285_p12 }
 0x4a4   : > { %s1019_s14 = sand.u32 1, %s2149_s7  }
 0x4a5   : > { %s1020_s11 = scalar_lea.sflag [#allocation4], %s1019_s14 }
 0x4a6   : > { %1667 = dma.done.wait (%p1286_p0), %s1020_s11, 128  }
 0x4a7   : > { %1669 = vsyncadd (%p1286_p0), %s1020_s11, 4294967168  ;;  %s2152_s12 = sld [smem:[#allocation27_spill]]  ;;  %s2155_s30 = smov %s1676_s10 }
 0x4a8   : > { %s2153_s18 = sld [smem:[#allocation25_spill]] }
 0x4a9   : > { %s2154_s11 = sld [smem:[#allocation29_spill]] }
 0x4ad   : > { %p30_p5 = scmp.ge.s32.totalorder %s2152_s12, 4  }
 0x4ae   : > { %s2156_s10 = smov %s2153_s18 }
 0x4af   :  { %32 = sbr.rel (!%p30_p5) target bundleno = 17 (0x11), region = 157 }
 0x4b4   :  { %1026 = vsyncpa [#allocation3], 1 }
 0x4b5   :  { %1028 = vsyncpa [#allocation3 + $0x1], 1 }
 0x4b6   :  { %1029 = vsyncpa [#allocation6], 1 }
 0x4b7   :  { %1031 = vsyncpa [#allocation6 + $0x1], 1 }
 0x4b8   :  { %1032 = vsyncpa [#allocation9], 1 }
 0x4b9   :  { %1034 = vsyncpa [#allocation9 + $0x1], 1 }
 0x4ba   :  { %1035 = vsyncpa [#allocation12], 1 }
 0x4bb   :  { %1036 = vsyncpa [#allocation15], 1 }
 0x4bc   :  { %1037 = vsyncpa [#allocation4], 1 }
 0x4bd   :  { %1039 = vsyncpa [#allocation4 + $0x1], 1 }

</bundles_post_ra>
